<compile_context>
chip_gen: v7x
topology: tpu7x:2x2x1
jax: 0.10.0
libtpu: 0.0.40
codegen_flags: <defaults>
</compile_context>

<pallas_src>
import jax
import jax.numpy as jnp
from jax.experimental import pallas as pl
from jax.experimental.pallas import tpu as pltpu

NEG_SLOPE = 0.01   # nn.LeakyReLU default negative_slope
LN_EPS = 1e-5      # nn.LayerNorm default eps
LANE = 128
NT_DIMS = (((1,), (1,)), ((), ()))   # contract both operands on their last dim


def _round_up(n, m):
    return ((n + m - 1) // m) * m


def _bf16_elementwise_default():
    """bf16 LeakyReLU only helps on bf16-capable VALUs (v6e/v7x); keep f32 on v5e."""
    try:
        kind = jax.devices()[0].device_kind.lower()
    except Exception:
        return True
    return not ("v5 lite" in kind or "v5e" in kind or "v5litepod" in kind)


def make_mlp_kernel(hidden_sizes, with_norm, bf16_elementwise):
    """Fused MLP over one batch tile.

    Ref order: x, then per hidden layer (w, vec), then w_out, b_out(SMEM), out.
    Per-tile shapes:
      x      [TILE_B, F]              f32  (cast to bf16 in-kernel)
      w_i    [in_pad, H_pad_i]        bf16 (zero-padded to 128 lanes)
      vec_i  [3 or 1, H_pad_i]        f32  rows = [bias, gamma, beta] (pad lanes are 0)
      w_out  [1, H_pad_last]          bf16
      b_out  [1, 1]                   f32  (SMEM scalar)
      out    [1, TILE_B]              f32  (lane-dense, unmasked vst)
    """
    num_hidden = len(hidden_sizes)

    def kernel(*refs):
        x_ref = refs[0]
        out_ref = refs[-1]
        b_out_ref = refs[-2]
        w_out_ref = refs[-3]

        h = x_ref[...].astype(jnp.bfloat16)                       # cast hidden under matmul
        idx = 1
        for li in range(num_hidden):
            w = refs[idx][...]                                    # bf16 [in_pad, H_pad]
            vec = refs[idx + 1][...]                              # f32  [3|1, H_pad]
            idx += 2
            b = vec[0:1, :]
            h = jnp.dot(h, w, preferred_element_type=jnp.float32) + b
            if with_norm:
                g = vec[1:2, :]
                be = vec[2:3, :]
                inv_h = 1.0 / float(hidden_sizes[li])
                # One-pass stats over the REAL width: padded lanes are exactly 0
                # (zero weight columns + zero bias), so full-lane sums are correct.
                mu = jnp.sum(h, axis=-1, keepdims=True) * inv_h
                ex2 = jnp.sum(h * h, axis=-1, keepdims=True) * inv_h
                var = jnp.maximum(ex2 - mu * mu, 0.0)             # clamp: cancellation-safe
                h = (h - mu) * jax.lax.rsqrt(var + LN_EPS) * g + be
            # LeakyReLU as max(h, a*h): vmul + vmax (no cmp/select)
            if bf16_elementwise:
                h = h.astype(jnp.bfloat16)
                h = jnp.maximum(h, NEG_SLOPE * h)
            else:
                h = jnp.maximum(h, NEG_SLOPE * h)
                h = h.astype(jnp.bfloat16)
            # TODO(synk): nn.Dropout is identity at inference; training-mode dropout
            # (pltpu.prng_random_bits mask) not implemented here.

        w_out = w_out_ref[...]                                    # bf16 [1, H_pad_last]
        # Final [H,1] projection computed transposed -> lane-dense [1, TILE_B] result.
        out_row = jax.lax.dot_general(w_out, h, NT_DIMS,
                                      preferred_element_type=jnp.float32)
        out_ref[...] = out_row + b_out_ref[0, 0]

    return kernel


def init_params(key, input_size, hidden_sizes, with_norm, param_dtype=jnp.bfloat16):
    """Matches the PyTorch module init:
    kaiming_normal_(nonlinearity='leaky_relu') -> std=sqrt(2/fan_in), Linear bias=0.01,
    LayerNorm gamma=1, beta=0.  Weights stored transposed [in, out], zero-padded to
    128-lane widths, bf16 for the MXU.  Per-layer (bias, gamma, beta) packed into one
    (3, H_pad) f32 array (or (1, H_pad) bias-only when with_norm=False)."""
    params = []
    dims = [input_size] + list(hidden_sizes)
    for i, hsz in enumerate(hidden_sizes):
        key, k = jax.random.split(key)
        fan_in = dims[i]
        std = (2.0 / fan_in) ** 0.5
        w = jax.random.normal(k, (dims[i], hsz), jnp.float32) * std
        in_pad = dims[i] if i == 0 else _round_up(dims[i], LANE)
        h_pad = _round_up(hsz, LANE)
        w_p = jnp.zeros((in_pad, h_pad), jnp.float32).at[:dims[i], :hsz].set(w)
        n_vec = 3 if with_norm else 1
        vec = jnp.zeros((n_vec, h_pad), jnp.float32)
        vec = vec.at[0, :hsz].set(0.01)            # bias
        if with_norm:
            vec = vec.at[1, :hsz].set(1.0)         # gamma (0 in pad lanes keeps pads at 0)
            # beta row stays 0
        params += [w_p.astype(param_dtype), vec]
    key, k = jax.random.split(key)
    std = (2.0 / hidden_sizes[-1]) ** 0.5
    w_out = jax.random.normal(k, (1, hidden_sizes[-1]), jnp.float32) * std
    h_pad_last = _round_up(hidden_sizes[-1], LANE)
    w_out_p = jnp.zeros((1, h_pad_last), jnp.float32).at[:, :hidden_sizes[-1]].set(w_out)
    b_out_p = jnp.full((1, 1), 0.01, jnp.float32)
    params += [w_out_p.astype(param_dtype), b_out_p]
    return params


def overtake_predictor(x, params, hidden_sizes, with_norm, *, tile_b=2048,
                       bf16_elementwise=None):
    """Batch-tiled fused forward. Output shape (B, 1), f32."""
    B, F = x.shape
    if bf16_elementwise is None:
        bf16_elementwise = _bf16_elementwise_default()

    # 128-lane-aligned batch tile; cap so num_tiles >= 2 when B allows (v7x: 2 TCs).
    tile_b = max(LANE, min(tile_b, _round_up(pl.cdiv(B, 2), LANE)))
    num_tiles = pl.cdiv(B, tile_b)
    b_pad = num_tiles * tile_b

    kernel = make_mlp_kernel(hidden_sizes, with_norm, bf16_elementwise)
    inputs = [x] + list(params)

    # x tiled over batch (ragged last tile reads undefined rows -> sliced off below);
    # all weights use constant index_maps -> DMA'd once, VMEM-resident across tiles;
    # scalar output bias goes to SMEM.
    in_specs = [pl.BlockSpec((tile_b, F), lambda i: (i, 0))]
    for p in params[:-1]:
        in_specs.append(pl.BlockSpec(p.shape, lambda i: (0, 0)))
    in_specs.append(pl.BlockSpec(memory_space=pltpu.MemorySpace.SMEM))   # b_out scalar

    out = pl.pallas_call(
        kernel,
        out_shape=jax.ShapeDtypeStruct((1, b_pad), jnp.float32),
        grid=(num_tiles,),
        in_specs=in_specs,
        out_specs=pl.BlockSpec((1, tile_b), lambda i: (0, i)),
        compiler_params=pltpu.CompilerParams(
            dimension_semantics=("parallel",),   # independent batch tiles; 2 TCs on v7x
        ),
    )(*inputs)
    return out.reshape(b_pad, 1)[:B]


def reference_forward(x, params, hidden_sizes, with_norm, bf16_elementwise):
    """Plain-JAX reference with identical numerics (bf16 matmul inputs, f32 accumulation,
    one-pass clamped LayerNorm over the real width, packed padded params)."""
    h = x.astype(jnp.bfloat16)
    idx = 0
    for li in range(len(hidden_sizes)):
        w, vec = params[idx], params[idx + 1]
        idx += 2
        h = jnp.dot(h, w, preferred_element_type=jnp.float32) + vec[0:1, :]
        if with_norm:
            g, be = vec[1:2, :], vec[2:3, :]
            inv_h = 1.0 / float(hidden_sizes[li])
            mu = jnp.sum(h, axis=-1, keepdims=True) * inv_h
            var = jnp.maximum(jnp.sum(h * h, axis=-1, keepdims=True) * inv_h - mu * mu, 0.0)
            h = (h - mu) * jax.lax.rsqrt(var + LN_EPS) * g + be
        if bf16_elementwise:
            h = h.astype(jnp.bfloat16)
            h = jnp.maximum(h, NEG_SLOPE * h)
        else:
            h = jnp.maximum(h, NEG_SLOPE * h).astype(jnp.bfloat16)
    w_out, b_out = params[idx], params[idx + 1]
    out = jax.lax.dot_general(w_out, h, NT_DIMS,
                              preferred_element_type=jnp.float32) + b_out[0, 0]
    return out.T   # (B, 1)


if __name__ == "__main__":
    # Module config: input_size=16, hidden_sizes=[32, 32], with_norm=True,
    # with_drop=True (dropout is identity at inference).
    input_size = 16
    hidden_sizes = (32, 32)
    with_norm = True
    B = 8

    key = jax.random.PRNGKey(0)
    kx, kp = jax.random.split(key)
    x = jax.random.normal(kx, (B, input_size), jnp.float32)
    params = init_params(kp, input_size, hidden_sizes, with_norm)

    bf16_ew = _bf16_elementwise_default()
    out = overtake_predictor(x, params, hidden_sizes, with_norm, bf16_elementwise=bf16_ew)
    out = jax.block_until_ready(out)

    ref = reference_forward(x, params, hidden_sizes, with_norm, bf16_ew)
    assert out.shape == (B, 1)
    assert jnp.allclose(out, ref, atol=1e-3, rtol=1e-3), "mismatch vs JAX reference"

    print("KERNEL_OK")
</pallas_src>

<mosaic_0001>
module attributes {stable_mosaic.version = 11 : i64} {
  func.func @kernel(%arg0: i32, %arg1: memref<128x16xf32, #tpu.memory_space<vmem>>, %arg2: memref<16x128xbf16, #tpu.memory_space<vmem>>, %arg3: memref<3x128xf32, #tpu.memory_space<vmem>>, %arg4: memref<128x128xbf16, #tpu.memory_space<vmem>>, %arg5: memref<3x128xf32, #tpu.memory_space<vmem>>, %arg6: memref<1x128xbf16, #tpu.memory_space<vmem>>, %arg7: memref<1x1xf32, #tpu.memory_space<smem>>, %arg8: memref<1x128xf32, #tpu.memory_space<vmem>>) attributes {dimension_semantics = [#tpu.dimension_semantics<parallel>], iteration_bounds = array<i64: 1>, scalar_prefetch = 0 : i64, scratch_operands = 0 : i64, tpu.core_type = #tpu.core_type<tc>, window_params = [{transform_indices = @transform_0, window_bounds = array<i64: 128, 16>}, {pipeline_mode = #tpu.pipeline_mode<synchronous>, transform_indices = @transform_1, window_bounds = array<i64: 16, 128>}, {pipeline_mode = #tpu.pipeline_mode<synchronous>, transform_indices = @transform_2, window_bounds = array<i64: 3, 128>}, {pipeline_mode = #tpu.pipeline_mode<synchronous>, transform_indices = @transform_3, window_bounds = array<i64: 128, 128>}, {pipeline_mode = #tpu.pipeline_mode<synchronous>, transform_indices = @transform_4, window_bounds = array<i64: 3, 128>}, {pipeline_mode = #tpu.pipeline_mode<synchronous>, transform_indices = @transform_5, window_bounds = array<i64: 1, 128>}, {transform_indices = @transform_6, window_bounds = array<i64: 1, 1>}, {transform_indices = @transform_7, window_bounds = array<i64: 1, 128>}]} {
    %c0 = arith.constant 0 : index
    %c0_0 = arith.constant 0 : index
    %0 = vector.load %arg1[%c0, %c0_0] : memref<128x16xf32, #tpu.memory_space<vmem>>, vector<128x16xf32>
    %1 = arith.truncf %0 : vector<128x16xf32> to vector<128x16xbf16>
    %c0_1 = arith.constant 0 : index
    %c0_2 = arith.constant 0 : index
    %2 = vector.load %arg2[%c0_1, %c0_2] : memref<16x128xbf16, #tpu.memory_space<vmem>>, vector<16x128xbf16>
    %c0_3 = arith.constant 0 : index
    %c0_4 = arith.constant 0 : index
    %3 = vector.load %arg3[%c0_3, %c0_4] : memref<3x128xf32, #tpu.memory_space<vmem>>, vector<3x128xf32>
    %4 = vector.extract_strided_slice %3 {offsets = [0, 0], sizes = [1, 128], strides = [1, 1]} : vector<3x128xf32> to vector<1x128xf32>
    %cst = arith.constant dense<0.000000e+00> : vector<128x128xf32>
    %5 = tpu.matmul %1, %2, %cst {dimension_numbers = #tpu.dot_dimension_numbers<[1], [0], [0], [1], [0, 0, 1, 1], [], []>} : vector<128x16xbf16>, vector<16x128xbf16>, vector<128x128xf32> -> vector<128x128xf32>
    %6 = vector.broadcast %4 : vector<1x128xf32> to vector<128x128xf32>
    %7 = arith.addf %5, %6 : vector<128x128xf32>
    %8 = vector.extract_strided_slice %3 {offsets = [1, 0], sizes = [1, 128], strides = [1, 1]} : vector<3x128xf32> to vector<1x128xf32>
    %9 = vector.extract_strided_slice %3 {offsets = [2, 0], sizes = [1, 128], strides = [1, 1]} : vector<3x128xf32> to vector<1x128xf32>
    %cst_5 = arith.constant dense<0.000000e+00> : vector<128xf32>
    %10 = vector.multi_reduction <add>, %7, %cst_5 [1] : vector<128x128xf32> to vector<128xf32>
    %11 = vector.shape_cast %10 : vector<128xf32> to vector<128x1xf32>
    %cst_6 = arith.constant 3.125000e-02 : f32
    %12 = vector.broadcast %cst_6 : f32 to vector<128x1xf32>
    %13 = arith.mulf %11, %12 : vector<128x1xf32>
    %14 = arith.mulf %7, %7 : vector<128x128xf32>
    %cst_7 = arith.constant dense<0.000000e+00> : vector<128xf32>
    %15 = vector.multi_reduction <add>, %14, %cst_7 [1] : vector<128x128xf32> to vector<128xf32>
    %16 = vector.shape_cast %15 : vector<128xf32> to vector<128x1xf32>
    %cst_8 = arith.constant 3.125000e-02 : f32
    %17 = vector.broadcast %cst_8 : f32 to vector<128x1xf32>
    %18 = arith.mulf %16, %17 : vector<128x1xf32>
    %19 = arith.mulf %13, %13 : vector<128x1xf32>
    %20 = arith.subf %18, %19 : vector<128x1xf32>
    %cst_9 = arith.constant 0.000000e+00 : f32
    %21 = vector.broadcast %cst_9 : f32 to vector<128x1xf32>
    %22 = arith.maximumf %20, %21 : vector<128x1xf32>
    %23 = vector.broadcast %13 : vector<128x1xf32> to vector<128x128xf32>
    %24 = arith.subf %7, %23 : vector<128x128xf32>
    %cst_10 = arith.constant 9.99999974E-6 : f32
    %25 = vector.broadcast %cst_10 : f32 to vector<128x1xf32>
    %26 = arith.addf %22, %25 : vector<128x1xf32>
    %27 = math.rsqrt %26 : vector<128x1xf32>
    %28 = vector.broadcast %27 : vector<128x1xf32> to vector<128x128xf32>
    %29 = arith.mulf %24, %28 : vector<128x128xf32>
    %30 = vector.broadcast %8 : vector<1x128xf32> to vector<128x128xf32>
    %31 = arith.mulf %29, %30 : vector<128x128xf32>
    %32 = vector.broadcast %9 : vector<1x128xf32> to vector<128x128xf32>
    %33 = arith.addf %31, %32 : vector<128x128xf32>
    %34 = arith.truncf %33 : vector<128x128xf32> to vector<128x128xbf16>
    %cst_11 = arith.constant 1.000980e-02 : bf16
    %35 = vector.broadcast %cst_11 : bf16 to vector<128x128xbf16>
    %36 = arith.mulf %35, %34 : vector<128x128xbf16>
    %37 = arith.maximumf %34, %36 : vector<128x128xbf16>
    %c0_12 = arith.constant 0 : index
    %c0_13 = arith.constant 0 : index
    %38 = vector.load %arg4[%c0_12, %c0_13] : memref<128x128xbf16, #tpu.memory_space<vmem>>, vector<128x128xbf16>
    %c0_14 = arith.constant 0 : index
    %c0_15 = arith.constant 0 : index
    %39 = vector.load %arg5[%c0_14, %c0_15] : memref<3x128xf32, #tpu.memory_space<vmem>>, vector<3x128xf32>
    %40 = vector.extract_strided_slice %39 {offsets = [0, 0], sizes = [1, 128], strides = [1, 1]} : vector<3x128xf32> to vector<1x128xf32>
    %cst_16 = arith.constant dense<0.000000e+00> : vector<128x128xf32>
    %41 = tpu.matmul %37, %38, %cst_16 {dimension_numbers = #tpu.dot_dimension_numbers<[1], [0], [0], [1], [0, 0, 1, 1], [], []>} : vector<128x128xbf16>, vector<128x128xbf16>, vector<128x128xf32> -> vector<128x128xf32>
    %42 = vector.broadcast %40 : vector<1x128xf32> to vector<128x128xf32>
    %43 = arith.addf %41, %42 : vector<128x128xf32>
    %44 = vector.extract_strided_slice %39 {offsets = [1, 0], sizes = [1, 128], strides = [1, 1]} : vector<3x128xf32> to vector<1x128xf32>
    %45 = vector.extract_strided_slice %39 {offsets = [2, 0], sizes = [1, 128], strides = [1, 1]} : vector<3x128xf32> to vector<1x128xf32>
    %cst_17 = arith.constant dense<0.000000e+00> : vector<128xf32>
    %46 = vector.multi_reduction <add>, %43, %cst_17 [1] : vector<128x128xf32> to vector<128xf32>
    %47 = vector.shape_cast %46 : vector<128xf32> to vector<128x1xf32>
    %cst_18 = arith.constant 3.125000e-02 : f32
    %48 = vector.broadcast %cst_18 : f32 to vector<128x1xf32>
    %49 = arith.mulf %47, %48 : vector<128x1xf32>
    %50 = arith.mulf %43, %43 : vector<128x128xf32>
    %cst_19 = arith.constant dense<0.000000e+00> : vector<128xf32>
    %51 = vector.multi_reduction <add>, %50, %cst_19 [1] : vector<128x128xf32> to vector<128xf32>
    %52 = vector.shape_cast %51 : vector<128xf32> to vector<128x1xf32>
    %cst_20 = arith.constant 3.125000e-02 : f32
    %53 = vector.broadcast %cst_20 : f32 to vector<128x1xf32>
    %54 = arith.mulf %52, %53 : vector<128x1xf32>
    %55 = arith.mulf %49, %49 : vector<128x1xf32>
    %56 = arith.subf %54, %55 : vector<128x1xf32>
    %cst_21 = arith.constant 0.000000e+00 : f32
    %57 = vector.broadcast %cst_21 : f32 to vector<128x1xf32>
    %58 = arith.maximumf %56, %57 : vector<128x1xf32>
    %59 = vector.broadcast %49 : vector<128x1xf32> to vector<128x128xf32>
    %60 = arith.subf %43, %59 : vector<128x128xf32>
    %cst_22 = arith.constant 9.99999974E-6 : f32
    %61 = vector.broadcast %cst_22 : f32 to vector<128x1xf32>
    %62 = arith.addf %58, %61 : vector<128x1xf32>
    %63 = math.rsqrt %62 : vector<128x1xf32>
    %64 = vector.broadcast %63 : vector<128x1xf32> to vector<128x128xf32>
    %65 = arith.mulf %60, %64 : vector<128x128xf32>
    %66 = vector.broadcast %44 : vector<1x128xf32> to vector<128x128xf32>
    %67 = arith.mulf %65, %66 : vector<128x128xf32>
    %68 = vector.broadcast %45 : vector<1x128xf32> to vector<128x128xf32>
    %69 = arith.addf %67, %68 : vector<128x128xf32>
    %70 = arith.truncf %69 : vector<128x128xf32> to vector<128x128xbf16>
    %cst_23 = arith.constant 1.000980e-02 : bf16
    %71 = vector.broadcast %cst_23 : bf16 to vector<128x128xbf16>
    %72 = arith.mulf %71, %70 : vector<128x128xbf16>
    %73 = arith.maximumf %70, %72 : vector<128x128xbf16>
    %c0_24 = arith.constant 0 : index
    %c0_25 = arith.constant 0 : index
    %74 = vector.load %arg6[%c0_24, %c0_25] : memref<1x128xbf16, #tpu.memory_space<vmem>>, vector<1x128xbf16>
    %cst_26 = arith.constant dense<0.000000e+00> : vector<1x128xf32>
    %75 = tpu.matmul %74, %73, %cst_26 {dimension_numbers = #tpu.dot_dimension_numbers<[1], [1], [0], [0], [0, 0, 1, 0], [], []>} : vector<1x128xbf16>, vector<128x128xbf16>, vector<1x128xf32> -> vector<1x128xf32>
    %c0_27 = arith.constant 0 : index
    %c0_28 = arith.constant 0 : index
    %76 = memref.load %arg7[%c0_27, %c0_28] : memref<1x1xf32, #tpu.memory_space<smem>>
    %77 = vector.broadcast %76 : f32 to vector<1x128xf32>
    %78 = arith.addf %75, %77 : vector<1x128xf32>
    %c0_29 = arith.constant 0 : index
    %c0_30 = arith.constant 0 : index
    %79 = vector.load %arg8[%c0_29, %c0_30] : memref<1x128xf32, #tpu.memory_space<vmem>>, vector<1x128xf32>
    tpu.vector_store %arg8[%c0_29, %c0_30], %78 {strides = array<i32>} : memref<1x128xf32, #tpu.memory_space<vmem>>, vector<1x128xf32>,
    return
  }
  func.func @transform_0(%arg0: i32) -> (i32, i32) {
    %c0_i32 = arith.constant 0 : i32
    %c0_i32_0 = arith.constant 0 : i32
    return %arg0, %c0_i32 : i32, i32
  }
  func.func @transform_1(%arg0: i32) -> (i32, i32) {
    %c0_i32 = arith.constant 0 : i32
    %c0_i32_0 = arith.constant 0 : i32
    %c0_i32_1 = arith.constant 0 : i32
    return %c0_i32, %c0_i32_0 : i32, i32
  }
  func.func @transform_2(%arg0: i32) -> (i32, i32) {
    %c0_i32 = arith.constant 0 : i32
    %c0_i32_0 = arith.constant 0 : i32
    %c0_i32_1 = arith.constant 0 : i32
    return %c0_i32, %c0_i32_0 : i32, i32
  }
  func.func @transform_3(%arg0: i32) -> (i32, i32) {
    %c0_i32 = arith.constant 0 : i32
    %c0_i32_0 = arith.constant 0 : i32
    %c0_i32_1 = arith.constant 0 : i32
    return %c0_i32, %c0_i32_0 : i32, i32
  }
  func.func @transform_4(%arg0: i32) -> (i32, i32) {
    %c0_i32 = arith.constant 0 : i32
    %c0_i32_0 = arith.constant 0 : i32
    %c0_i32_1 = arith.constant 0 : i32
    return %c0_i32, %c0_i32_0 : i32, i32
  }
  func.func @transform_5(%arg0: i32) -> (i32, i32) {
    %c0_i32 = arith.constant 0 : i32
    %c0_i32_0 = arith.constant 0 : i32
    %c0_i32_1 = arith.constant 0 : i32
    return %c0_i32, %c0_i32_0 : i32, i32
  }
  func.func @transform_6(%arg0: i32) -> (i32, i32) {
    %c0_i32 = arith.constant 0 : i32
    %c0_i32_0 = arith.constant 0 : i32
    %c0_i32_1 = arith.constant 0 : i32
    return %c0_i32, %c0_i32_0 : i32, i32
  }
  func.func @transform_7(%arg0: i32) -> (i32, i32) {
    %c0_i32 = arith.constant 0 : i32
    %c0_i32_0 = arith.constant 0 : i32
    return %c0_i32, %arg0 : i32, i32
  }
}

</mosaic_0001>

<bundles_post_ra>
// kernel: tpu_custom_call.1
= control target key start
LH: loop header
LB: loop body
LE: loop exit
PB: predicated region body
PF: predicated region fallthrough
CT: control target
= control target key end

     0   :  { %13 = vsyncpa [#allocation4], 0  ;;  %s1930_s0 = inlined_call_operand.hbm [shape: f32[8,16], index: 0, kind: input, shape index: {}]   ;;  %s1931_s1 = inlined_call_operand.hbm [shape: bf16[16,128], index: 1, kind: input, shape index: {}]   ;;  %s1932_s2 = inlined_call_operand.vmem [shape: f32[3,128], index: 2, kind: input, shape index: {}]   ;;  %s1933_s3 = inlined_call_operand.hbm [shape: bf16[128,128], index: 3, kind: input, shape index: {}]   ;;  %s1934_s4 = inlined_call_operand.vmem [shape: f32[3,128], index: 4, kind: input, shape index: {}]   ;;  %s1935_s5 = inlined_call_operand.vmem [shape: bf16[1,128], index: 5, kind: input, shape index: {}]   ;;  %s1936_s6 = inlined_call_operand.<no memory space> [shape: f32[1,1], index: 6, kind: input, shape index: {}]   ;;  %s1937_s7 = inlined_call_operand.hbm [shape: f32[1,128], index: 7, kind: output, shape index: {}]  }
   0x1   :  { %14 = vsyncpa [#allocation7], 0 }
   0x2   :  { %15 = vsyncpa [#allocation5], 0 }
   0x3   :  { %20 = vsyncadd [#allocation4], 1920  ;;  %s1330_s24 = smov [#allocation6]   ;;  %s1236_s28 = scalar_lea.hbm %s1931_s1, 128 }
   0x4   :  { %s33_s25 = sshll.u32 %s1330_s24, 4  ;;  %p1237_p0 = scmp.ne.s32.totalorder %s1931_s1, %s1236_s28  ;;  %s34_s25 = int_to_ptr.vmem [resolvable:$true] %s33_s25 }
   0x5   :  { %p1240_p1 = scmp.lt.u32.totalorder %s1236_s28, %s1931_s1 }
   0x7   :  { %p1242_p2 = pnand %p1240_p1, %p1237_p0 }
   0x9   :  { %1245 = shalt.err (!%p1242_p2)
}
   0xa   :  { %s1246_s10 = scalar_lea.vmem %s34_s25, 128  ;;  %p1251_p4 = scmp.lt.s32.totalorder %s34_s25, %s34_s25 }
   0xb   :  { %p1247_p3 = scmp.ne.s32.totalorder %s34_s25, %s1246_s10  ;;  %p1252_p5 = scmp.lt.s32.totalorder %s1246_s10, %s1246_s10 }
   0xd   :  { %p1253_p6 = por %p1252_p5, %p1251_p4 }
   0xf   :  { %p1254_p7 = pnand %p1253_p6, %p1247_p3 }
  0x11   :  { %1257 = shalt.err (!%p1254_p7)
}
  0x12   :  { %s1331_s11 = smov 64   ;;  %s1332_s12 = smov 4  }
  0x13   :  { %39 = dma.hbm_to_vmem [thread:$0]  %s1931_s1, 128, %s34_s25, [#allocation7], %s1331_s11, %s1331_s11, %s1332_s12  }
  0x14   :  { %s1333_s15 = smov [#allocation3]   ;;  %s1258_s19 = scalar_lea.hbm %s1930_s0, 128 }
  0x15   :  { %s21_s16 = sshll.u32 %s1333_s15, 4  ;;  %p1259_p8 = scmp.ne.s32.totalorder %s1930_s0, %s1258_s19  ;;  %s22_s16 = int_to_ptr.vmem [resolvable:$true] %s21_s16 }
  0x16   :  { %p1262_p9 = scmp.lt.u32.totalorder %s1258_s19, %s1930_s0 }
  0x18   :  { %p1264_p10 = pnand %p1262_p9, %p1259_p8 }
  0x1a   :  { %1267 = shalt.err (!%p1264_p10)
}
  0x1b   :  { %s1268_s24 = scalar_lea.vmem %s22_s16, 128  ;;  %s1272_s1 = scalar_lea.vmem %s22_s16, 2048 }
  0x1c   :  { %p1269_p11 = scmp.ne.s32.totalorder %s22_s16, %s1268_s24  ;;  %p1273_p12 = scmp.lt.s32.totalorder %s22_s16, %s22_s16 }
  0x1d   :  { %p1274_p13 = scmp.lt.s32.totalorder %s1272_s1, %s1268_s24 }
  0x1f   :  { %p1275_p0 = por %p1274_p13, %p1273_p12 }
  0x21   :  { %p1276_p1 = pnand %p1275_p0, %p1269_p11 }
  0x23   :  { %1279 = shalt.err (!%p1276_p1)
}
  0x24   :  { %s1334_s25 = smov 128   ;;  %s1335_s26 = smov 8  }
  0x25   :  { %27 = dma.hbm_to_vmem [thread:$0]  %s1930_s0, 128, %s22_s16, [#allocation4], %s1334_s25, %s1334_s25, %s1335_s26  }
  0x26   :  { %s1336_s29 = smov [#allocation8]   ;;  %s1280_s10 = scalar_lea.hbm %s1933_s3, 1024 }
  0x27   :  { %s47_s30 = sshll.u32 %s1336_s29, 4  ;;  %p1281_p2 = scmp.ne.s32.totalorder %s1933_s3, %s1280_s10  ;;  %s48_s30 = int_to_ptr.vmem [resolvable:$true] %s47_s30 }
  0x28   :  { %p1284_p3 = scmp.lt.u32.totalorder %s1280_s10, %s1933_s3 }
  0x2a   :  { %p1286_p4 = pnand %p1284_p3, %p1281_p2 }
  0x2c   :  { %1289 = shalt.err (!%p1286_p4)
}
  0x2d   :  { %s1290_s18 = scalar_lea.vmem %s48_s30, 1024  ;;  %p1295_p6 = scmp.lt.s32.totalorder %s48_s30, %s48_s30 }
  0x2e   :  { %p1291_p5 = scmp.ne.s32.totalorder %s48_s30, %s1290_s18  ;;  %p1296_p7 = scmp.lt.s32.totalorder %s1290_s18, %s1290_s18 }
  0x30   :  { %p1297_p8 = por %p1296_p7, %p1295_p6 }
  0x32   :  { %p1298_p9 = pnand %p1297_p8, %p1291_p5 }
  0x34   :  { %1301 = shalt.err (!%p1298_p9)
}
  0x35   :  { %53 = dma.hbm_to_vmem [thread:$0]  %s1933_s3, 1024, %s48_s30, [#allocation7], %s1331_s11, %s1331_s11, %s1332_s12  }
  0x36   :  { %1324 = dma.done.wait [#allocation4], 2048  }
  0x37   :  { %1325 = vsyncadd [#allocation4], 4294965248 }
  0x38   :  { %1326 = dma.done.wait [#allocation7], 1152  }
  0x39   :  { %1327 = vsyncadd [#allocation7], 4294966144  ;;  %v1163_v0 = vld [vmem:[#allocation6] sm:$0xff]   ;;  %v72_v2 = vld [vmem:[#allocation3 + $0x8] sm:$0xff]  ;;  %vm108_vm0 = vcmask 130048   ;;  %v98_v25 = vlaneseq  ;;  %vm1338_vm1 = vmmov 0  }
  0x3a   :  { %v71_v1 = vld [vmem:[#allocation3] sm:$0xff]  ;;  %v73_v3 = vld [vmem:[#allocation3 + $0x10] sm:$0xff]  ;;  %1083 = vmatprep.subr.bf16.mxu1 %v1163_v0  ;;  %v74_v5 = vld [vmem:[#allocation3 + $0x18] sm:$0xff]  ;;  %s1339_s22 = smov [#allocation9]  }
  0x3b   :  { %v87_v4 = vpack.c.bf16 %v72_v2, %v71_v1  ;;  %v75_v6 = vld [vmem:[#allocation3 + $0x20] sm:$0xff]  ;;  %v76_v7 = vld [vmem:[#allocation3 + $0x28] sm:$0xff]  ;;  %1084 = vmatpush3.bf16.msra.mxu1 %v1163_v0  ;;  %v88_v8 = vpack.c.bf16 %v74_v5, %v73_v3  ;;  %v77_v10 = vld [vmem:[#allocation3 + $0x30] sm:$0xff]  ;;  %v1430_v26 = vshrl.u32 %v98_v25, 7  ;;  %s1022_s23 = sshll.u32 %s1339_s22, 4  ;;  %s1023_s23 = int_to_ptr.vmem [resolvable:$true] %s1022_s23 }
  0x3c   :  { %v89_v9 = vpack.c.bf16 %v76_v7, %v75_v6  ;;  %v78_v11 = vld [vmem:[#allocation3 + $0x38] sm:$0xff]  ;;  %v79_v12 = vld [vmem:[#allocation3 + $0x40] sm:$0xff]  ;;  %v80_v13 = vld [vmem:[#allocation3 + $0x48] sm:$0xff]  ;;  %s1302_s24 = scalar_lea.vmem %s1023_s23, 16  ;;  %s1306_s1 = scalar_lea.vmem %s1023_s23, 32 }
  0x3d   :  { %1085 = vmatprep.mubr.msk.bf16.mxu1 %vm108_vm0, %v87_v4  ;;  %v90_v14 = vpack.c.bf16 %v78_v11, %v77_v10  ;;  %v91_v15 = vpack.c.bf16 %v80_v13, %v79_v12  ;;  %v81_v16 = vld [vmem:[#allocation3 + $0x50] sm:$0xff]  ;;  %v82_v17 = vld [vmem:[#allocation3 + $0x58] sm:$0xff]  ;;  %v83_v18 = vld [vmem:[#allocation3 + $0x60] sm:$0xff]  ;;  %v100_v27 = vsub.s32 0, %v1430_v26  ;;  %p1303_p10 = scmp.ne.s32.totalorder %s1023_s23, %s1302_s24  ;;  %p1307_p11 = scmp.lt.s32.totalorder %s1023_s23, %s1023_s23 }
  0x3e   :  { %1086 = vmatmul.mubr.msk.bf16.vlgmr.msra.gmra.mrb[0].mxu1 %vm108_vm0, %v88_v8  ;;  %v84_v19 = vld [vmem:[#allocation3 + $0x68] sm:$0xff]  ;;  %v92_v20 = vpack.c.bf16 %v82_v17, %v81_v16  ;;  %v85_v22 = vld [vmem:[#allocation3 + $0x70] sm:$0xff]  ;;  %v86_v23 = vld [vmem:[#allocation3 + $0x78] sm:$0xff]  ;;  %p1308_p12 = scmp.lt.s32.totalorder %s1306_s1, %s1302_s24 }
  0x3f   :  { %1089 = vmatprep.mubr.msk.bf16.mxu1 %vm108_vm0, %v89_v9  ;;  %v93_v21 = vpack.c.bf16 %v84_v19, %v83_v18  ;;  %v94_v24 = vpack.c.bf16 %v86_v23, %v85_v22  ;;  %v1436_v28 = vld [vmem:[%s1932_s2] sm:$0x7]  ;;  %v1164_v60 = vld [vmem:[#allocation8] sm:$0xff]   ;;  %v1165_v0 = vld [vmem:[#allocation8 + $0x8] sm:$0xff]  }
  0x40   :  { %v1441_v29 = vrot.slane %v1436_v28, %v100_v27  ;;  %1101 = vmatprep.subr.bf16.mxu1 %v1164_v60  ;;  %v1166_v2 = vld [vmem:[#allocation8 + $0x10] sm:$0xff]   ;;  %v1167_v5 = vld [vmem:[#allocation8 + $0x18] sm:$0xff]   ;;  %v1168_v8 = vld [vmem:[#allocation8 + $0x20] sm:$0xff]   ;;  %p1309_p13 = por %p1308_p12, %p1307_p11 }
  0x41   :  { %1102 = vmatpush3.bf16.msra.mxu1 %v1164_v60  ;;  %v1169_v12 = vld [vmem:[#allocation8 + $0x28] sm:$0xff]   ;;  %v1171_v17 = vld [vmem:[#allocation8 + $0x38] sm:$0xff]  }
  0x42   :  { %1103 = vmatprep.subr.bf16.mxu1 %v1165_v0  ;;  %p1310_p0 = pnand %p1309_p13, %p1303_p10 }
  0x45   :  { %1104 = vmatpush3.bf16.msra.mxu1 %v1165_v0 }
  0x46   :  { %1090 = vmatmul.mubr.msk.bf16.gmra.mrb[4].mxu1 %vm108_vm0, %v90_v14  ;;  %1105 = vmatprep.subr.bf16.mxu1 %v1166_v2  ;;  %v1170_v14 = vld [vmem:[#allocation8 + $0x30] sm:$0xff]  }
  0x47   :  { %1093 = vmatprep.mubr.msk.bf16.mxu1 %vm108_vm0, %v91_v15 }
  0x49   :  { %1106 = vmatpush3.bf16.msra.mxu1 %v1166_v2 }
  0x4a   :  { %1107 = vmatprep.subr.bf16.mxu1 %v1167_v5 }
  0x4d   :  { %1108 = vmatpush3.bf16.msra.mxu1 %v1167_v5 }
  0x4e   :  { %1094 = vmatmul.mubr.msk.bf16.gmra.mrb[8].mxu1 %vm108_vm0, %v92_v20  ;;  %1109 = vmatprep.subr.bf16.mxu1 %v1168_v8 }
  0x4f   :  { %1097 = vmatprep.mubr.msk.bf16.mxu1 %vm108_vm0, %v93_v21 }
  0x51   :  { %1110 = vmatpush3.bf16.msra.mxu1 %v1168_v8  ;;  %v456_v8 = vsub.s32 1, %v1430_v26 }
  0x52   :  { %1111 = vmatprep.subr.bf16.mxu1 %v1169_v12 }
  0x55   :  { %1112 = vmatpush3.bf16.msra.mxu1 %v1169_v12 }
  0x56   :  { %1098 = vmatmul.mubr.msk.bf16.gmra.mrb[12].mxu1 %vm108_vm0, %v94_v24  ;;  %1113 = vmatprep.subr.bf16.mxu1 %v1170_v14 }
  0x59   :  { %1114 = vmatpush3.bf16.msra.mxu1 %v1170_v14  ;;  %v476_v14 = vsub.s32 2, %v1430_v26 }
  0x5a   :  { %1115 = vmatprep.subr.bf16.mxu1 %v1171_v17 }
  0x5d   :  { %1116 = vmatpush3.bf16.msra.mxu1 %v1171_v17 }
 0x111   :  { %v1087_v30 = vpop.f32.mrb[0].mxu1 }
 0x112   :  { %v1444_v31 = vadd.f32 %v1087_v30, %v1441_v29  ;;  %v167_v32 = vpop.f32.mrb[1].mxu1 }
 0x113   :  { %v1447_v33 = vadd.f32 %v167_v32, %v1441_v29  ;;  %v1088_v34 = vpop.f32.mrb[2].mxu1 }
 0x114   :  { %234 = vadd.xlane.f32.xlu1 %v1444_v31  ;;  %v170_v35 = vpop.f32.mrb[3].mxu1  ;;  %v1452_v36 = vadd.f32 %v1088_v34, %v1441_v29  ;;  %v280_v45 = vmul.f32 %v1444_v31, %v1444_v31 }
 0x115   :  { %230 = vadd.xlane.f32.xlu0 %v1447_v33  ;;  %v1455_v37 = vadd.f32 %v170_v35, %v1441_v29  ;;  %v278_v41 = vmul.f32 %v1447_v33, %v1447_v33 }
 0x116   :  { %v281_v44 = vmul.f32 %v1452_v36, %v1452_v36 }
 0x117   :  { %v279_v39 = vmul.f32 %v1455_v37, %v1455_v37 }
 0x118   :  { %236 = vadd.xlane.f32.xlu1 %v1452_v36 }
 0x119   :  { %232 = vadd.xlane.f32.xlu0 %v1455_v37  ;;  %v1091_v38 = vpop.f32.mrb[4].mxu1 }
 0x11a   :  { %v183_v40 = vpop.f32.mrb[5].mxu1  ;;  %v1471_v49 = vadd.f32 %v1091_v38, %v1441_v29 }
 0x11b   :  { %v1092_v42 = vpop.f32.mrb[6].mxu1  ;;  %v1479_v53 = vadd.f32 %v183_v40, %v1441_v29 }
 0x11c   :  { %296 = vadd.xlane.f32.xlu1 %v279_v39  ;;  %v186_v43 = vpop.f32.mrb[7].mxu1  ;;  %v1468_v46 = vadd.f32 %v1092_v42, %v1441_v29  ;;  %v284_v62 = vmul.f32 %v1471_v49, %v1471_v49 }
 0x11d   :  { %294 = vadd.xlane.f32.xlu0 %v278_v41  ;;  %v1476_v52 = vadd.f32 %v186_v43, %v1441_v29  ;;  %v282_v57 = vmul.f32 %v1479_v53, %v1479_v53 }
 0x11e   :  { %v285_v61 = vmul.f32 %v1468_v46, %v1468_v46 }
 0x11f   :  { %v283_v55 = vmul.f32 %v1476_v52, %v1476_v52 }
 0x120   :  { %300 = vadd.xlane.f32.xlu1 %v281_v44 }
 0x121   :  { %298 = vadd.xlane.f32.xlu0 %v280_v45  ;;  %v1095_v47 = vpop.f32.mrb[8].mxu1 }
 0x122   :  { %v199_v48 = vpop.f32.mrb[9].mxu1  ;;  %v1495_v1 = vadd.f32 %v1095_v47, %v1441_v29 }
 0x123   :  { %v1096_v50 = vpop.f32.mrb[10].mxu1  ;;  %v1503_v4 = vadd.f32 %v199_v48, %v1441_v29 }
 0x124   :  { %244 = vadd.xlane.f32.xlu1 %v1468_v46  ;;  %v202_v51 = vpop.f32.mrb[11].mxu1  ;;  %v1492_v63 = vadd.f32 %v1096_v50, %v1441_v29  ;;  %v288_v10 = vmul.f32 %v1495_v1, %v1495_v1 }
 0x125   :  { %242 = vadd.xlane.f32.xlu0 %v1471_v49  ;;  %v1500_v3 = vadd.f32 %v202_v51, %v1441_v29  ;;  %v286_v7 = vmul.f32 %v1503_v4, %v1503_v4 }
 0x126   :  { %v289_v9 = vmul.f32 %v1492_v63, %v1492_v63 }
 0x127   :  { %v287_v6 = vmul.f32 %v1500_v3, %v1500_v3 }
 0x128   :  { %240 = vadd.xlane.f32.xlu1 %v1476_v52 }
 0x129   :  { %238 = vadd.xlane.f32.xlu0 %v1479_v53  ;;  %v1099_v54 = vpop.f32.mrb[12].mxu1 }
 0x12a   :  { %v215_v56 = vpop.f32.mrb[13].mxu1  ;;  %v1519_v13 = vadd.f32 %v1099_v54, %v1441_v29 }
 0x12b   :  { %v1100_v58 = vpop.f32.mrb[14].mxu1  ;;  %v1527_v16 = vadd.f32 %v215_v56, %v1441_v29 }
 0x12c   :  { %304 = vadd.xlane.f32.xlu1 %v283_v55  ;;  %v218_v59 = vpop.f32.mrb[15].mxu1  ;;  %v1516_v11 = vadd.f32 %v1100_v58, %v1441_v29  ;;  %v292_v21 = vmul.f32 %v1519_v13, %v1519_v13 }
 0x12d   :  { %302 = vadd.xlane.f32.xlu0 %v282_v57  ;;  %v1524_v15 = vadd.f32 %v218_v59, %v1441_v29  ;;  %v290_v19 = vmul.f32 %v1527_v16, %v1527_v16 }
 0x12e   :  { %v293_v20 = vmul.f32 %v1516_v11, %v1516_v11 }
 0x12f   :  { %v291_v18 = vmul.f32 %v1524_v15, %v1524_v15 }
 0x130   :  { %308 = vadd.xlane.f32.xlu1 %v285_v61 }
 0x131   :  { %306 = vadd.xlane.f32.xlu0 %v284_v62 }
 0x134   :  { %252 = vadd.xlane.f32.xlu1 %v1492_v63 }
 0x135   :  { %250 = vadd.xlane.f32.xlu0 %v1495_v1 }
 0x138   :  { %248 = vadd.xlane.f32.xlu1 %v1500_v3 }
 0x139   :  { %246 = vadd.xlane.f32.xlu0 %v1503_v4 }
 0x13c   :  { %312 = vadd.xlane.f32.xlu1 %v287_v6 }
 0x13d   :  { %310 = vadd.xlane.f32.xlu0 %v286_v7 }
 0x140   :  { %316 = vadd.xlane.f32.xlu1 %v289_v9 }
 0x141   :  { %314 = vadd.xlane.f32.xlu0 %v288_v10 }
 0x144   :  { %260 = vadd.xlane.f32.xlu1 %v1516_v11 }
 0x145   :  { %258 = vadd.xlane.f32.xlu0 %v1519_v13 }
 0x148   :  { %256 = vadd.xlane.f32.xlu1 %v1524_v15 }
 0x149   :  { %254 = vadd.xlane.f32.xlu0 %v1527_v16 }
 0x14c   :  { %320 = vadd.xlane.f32.xlu1 %v291_v18  ;;  %v1560_v18 = vrot.slane %v1436_v28, %v456_v8 }
 0x14d   :  { %318 = vadd.xlane.f32.xlu0 %v290_v19 }
 0x150   :  { %324 = vadd.xlane.f32.xlu1 %v293_v20 }
 0x151   :  { %322 = vadd.xlane.f32.xlu0 %v292_v21 }
 0x1a1   :  { %v235_v22 = vpop.xlane.xlu1 %234 }
 0x1a2   :  { %v231_v23 = vpop.xlane.xlu0 %230  ;;  %v1543_v40 = vmul.f32 0.03125, %v235_v22 }
 0x1a3   :  { %v1539_v29 = vmul.f32 0.03125, %v231_v23 }
 0x1a4   :  { %v344_v54 = vmul.f32 %v1543_v40, %v1543_v40 }
 0x1a5   :  { %v237_v24 = vpop.xlane.xlu1 %236  ;;  %v342_v41 = vmul.f32 %v1539_v29, %v1539_v29 }
 0x1a6   :  { %v233_v25 = vpop.xlane.xlu0 %232  ;;  %v1541_v35 = vmul.f32 0.03125, %v237_v24 }
 0x1a7   :  { %v263_v30 = vmul.f32 0.03125, %v233_v25 }
 0x1a8   :  { %v345_v47 = vmul.f32 %v1541_v35, %v1541_v35 }
 0x1a9   :  { %v343_v32 = vmul.f32 %v263_v30, %v263_v30  ;;  %v297_v34 = vpop.xlane.xlu1 %296  ;;  %v391_v23 = vsub.f32 %v1455_v37, %v263_v30  ;;  %v393_v37 = vsub.f32 %v1452_v36, %v1541_v35  ;;  %v392_v36 = vsub.f32 %v1444_v31, %v1543_v40 }
 0x1aa   :  { %v327_v38 = vmul.f32 0.03125, %v297_v34  ;;  %v295_v39 = vpop.xlane.xlu0 %294 }
 0x1ab   :  { %v326_v42 = vmul.f32 0.03125, %v295_v39 }
 0x1ac   :  { %v359_v43 = vsub.f32 %v327_v38, %v343_v32  ;;  %v390_v38 = vsub.f32 %v1447_v33, %v1539_v29 }
 0x1ad   :  { %v358_v44 = vsub.f32 %v326_v42, %v342_v41  ;;  %v301_v45 = vpop.xlane.xlu1 %300  ;;  %v1576_v42 = vrot.slane %v1436_v28, %v476_v14 }
 0x1ae   :  { %v375_v48 = vmax.f32 %v359_v43, 0.0  ;;  %v329_v50 = vmul.f32 0.03125, %v301_v45  ;;  %v299_v51 = vpop.xlane.xlu0 %298 }
 0x1af   :  { %v374_v55 = vmax.f32 %v358_v44, 0.0  ;;  %v328_v56 = vmul.f32 0.03125, %v299_v51 }
 0x1b0   :  { %v407_v57 = vadd.f32 1e-05, %v375_v48  ;;  %v361_v58 = vsub.f32 %v329_v50, %v345_v47 }
 0x1b1   :  { %v406_v59 = vadd.f32 1e-05, %v374_v55  ;;  %v360_v60 = vsub.f32 %v328_v56, %v344_v54  ;;  %v245_v61 = vpop.xlane.xlu1 %244 }
 0x1b2   :  { %1172 = vrsqrt.f32 %v407_v57  ;;  %v377_v62 = vmax.f32 %v361_v58, 0.0  ;;  %v243_v0 = vpop.xlane.xlu0 %242  ;;  %v1562_v19 = vmul.f32 0.03125, %v245_v61 }
 0x1b3   :  { %1174 = vrsqrt.f32 %v406_v59  ;;  %v376_v2 = vmax.f32 %v360_v60, 0.0  ;;  %v1567_v24 = vmul.f32 0.03125, %v243_v0 }
 0x1b4   :  { %v409_v5 = vadd.f32 1e-05, %v377_v62  ;;  %v349_v45 = vmul.f32 %v1562_v19, %v1562_v19 }
 0x1b5   :  { %v408_v6 = vadd.f32 1e-05, %v376_v2  ;;  %v241_v7 = vpop.xlane.xlu1 %240  ;;  %v348_v29 = vmul.f32 %v1567_v24, %v1567_v24 }
 0x1b6   :  { %1176 = vrsqrt.f32 %v409_v5  ;;  %v1552_v9 = vmul.f32 0.03125, %v241_v7  ;;  %v239_v10 = vpop.xlane.xlu0 %238 }
 0x1b7   :  { %1178 = vrsqrt.f32 %v408_v6  ;;  %v1554_v12 = vmul.f32 0.03125, %v239_v10 }
 0x1b8   :  { %v347_v20 = vmul.f32 %v1552_v9, %v1552_v9 }
 0x1b9   :  { %v305_v17 = vpop.xlane.xlu1 %304  ;;  %v346_v25 = vmul.f32 %v1554_v12, %v1554_v12 }
 0x1ba   :  { %v331_v21 = vmul.f32 0.03125, %v305_v17  ;;  %v303_v22 = vpop.xlane.xlu0 %302 }
 0x1bb   :  { %v330_v32 = vmul.f32 0.03125, %v303_v22 }
 0x1bc   :  { %v1173_v34 = vpop.eup %1172  ;;  %v363_v39 = vsub.f32 %v331_v21, %v347_v20 }
 0x1bd   :  { %v1175_v41 = vpop.eup %1174  ;;  %v362_v30 = vsub.f32 %v330_v32, %v346_v25  ;;  %v309_v43 = vpop.xlane.xlu1 %308  ;;  %v439_v44 = vmul.f32 %v1173_v34, %v391_v23 }
 0x1be   :  { %v379_v47 = vmax.f32 %v363_v39, 0.0  ;;  %v333_v48 = vmul.f32 0.03125, %v309_v43  ;;  %v307_v50 = vpop.xlane.xlu0 %306  ;;  %v438_v33 = vmul.f32 %v1175_v41, %v390_v38  ;;  %v395_v41 = vsub.f32 %v1476_v52, %v1552_v9 }
 0x1bf   :  { %v378_v51 = vmax.f32 %v362_v30, 0.0  ;;  %v332_v54 = vmul.f32 0.03125, %v307_v50  ;;  %v459_v28 = vmul.f32 %v1560_v18, %v439_v44  ;;  %v394_v52 = vsub.f32 %v1479_v53, %v1554_v12 }
 0x1c0   :  { %v1177_v55 = vpop.eup %1176  ;;  %v411_v35 = vadd.f32 1e-05, %v379_v47  ;;  %v365_v56 = vsub.f32 %v333_v48, %v349_v45  ;;  %v458_v62 = vmul.f32 %v1560_v18, %v438_v33 }
 0x1c1   :  { %v1179_v57 = vpop.eup %1178  ;;  %v441_v58 = vmul.f32 %v1177_v55, %v393_v37  ;;  %v410_v59 = vadd.f32 1e-05, %v378_v51  ;;  %v364_v60 = vsub.f32 %v332_v54, %v348_v29  ;;  %v253_v61 = vpop.xlane.xlu1 %252  ;;  %v479_v10 = vadd.f32 %v1576_v42, %v459_v28 }
 0x1c2   :  { %v440_v0 = vmul.f32 %v1179_v57, %v392_v36  ;;  %1180 = vrsqrt.f32 %v411_v35  ;;  %v381_v2 = vmax.f32 %v365_v56, 0.0  ;;  %v251_v5 = vpop.xlane.xlu0 %250  ;;  %v478_v21 = vadd.f32 %v1576_v42, %v458_v62 }
 0x1c3   :  { %v461_v6 = vmul.f32 %v1560_v18, %v441_v58  ;;  %1182 = vrsqrt.f32 %v410_v59  ;;  %v380_v7 = vmax.f32 %v364_v60, 0.0  ;;  %v1600_v43 = vmul.f32 0.03125, %v253_v61 }
 0x1c4   :  { %v460_v31 = vmul.f32 %v1560_v18, %v440_v0  ;;  %v413_v40 = vadd.f32 1e-05, %v381_v2  ;;  %v494_v38 = vpack.c.bf16 %v479_v10, %v478_v21  ;;  %v1604_v50 = vmul.f32 0.03125, %v251_v5 }
 0x1c5   :  { %v412_v17 = vadd.f32 1e-05, %v380_v7  ;;  %v249_v20 = vpop.xlane.xlu1 %248  ;;  %v481_v32 = vadd.f32 %v1576_v42, %v461_v6  ;;  %v353_v57 = vmul.f32 %v1600_v43, %v1600_v43  ;;  %v397_v5 = vsub.f32 %v1468_v46, %v1562_v19 }
 0x1c6   :  { %1184 = vrsqrt.f32 %v413_v40  ;;  %v1592_v22 = vmul.f32 0.03125, %v249_v20  ;;  %v247_v23 = vpop.xlane.xlu0 %246  ;;  %v480_v25 = vadd.f32 %v1576_v42, %v460_v31  ;;  %v502_v30 = vmul.bf16 1009007652, %v494_v38 }
 0x1c7   :  { %1186 = vrsqrt.f32 %v412_v17  ;;  %v1596_v34 = vmul.f32 0.03125, %v247_v23  ;;  %v352_v62 = vmul.f32 %v1604_v50, %v1604_v50  ;;  %v396_v40 = vsub.f32 %v1471_v49, %v1567_v24 }
 0x1c8   :  { %v495_v39 = vpack.c.bf16 %v481_v32, %v480_v25  ;;  %v351_v44 = vmul.f32 %v1592_v22, %v1592_v22  ;;  %v510_v29 = vmax.bf16 %v502_v30, %v494_v38 }
 0x1c9   :  { %v313_v37 = vpop.xlane.xlu1 %312  ;;  %v350_v33 = vmul.f32 %v1596_v34, %v1596_v34 }
 0x1ca   :  { %v335_v45 = vmul.f32 0.03125, %v313_v37  ;;  %v311_v47 = vpop.xlane.xlu0 %310  ;;  %v503_v48 = vmul.bf16 1009007652, %v495_v39  ;;  %1117 = vmatprep.mubr.bf16.mxu1 %v510_v29 }
 0x1cb   :  { %v334_v51 = vmul.f32 0.03125, %v311_v47 }
 0x1cc   :  { %v1181_v54 = vpop.eup %1180  ;;  %v367_v9 = vsub.f32 %v335_v45, %v351_v44  ;;  %v511_v28 = vmax.bf16 %v503_v48, %v495_v39 }
 0x1cd   :  { %v1183_v55 = vpop.eup %1182  ;;  %v366_v36 = vsub.f32 %v334_v51, %v350_v33  ;;  %v317_v35 = vpop.xlane.xlu1 %316  ;;  %v443_v56 = vmul.f32 %v1181_v54, %v395_v41 }
 0x1ce   :  { %v383_v58 = vmax.f32 %v367_v9, 0.0  ;;  %v337_v59 = vmul.f32 0.03125, %v317_v35  ;;  %1118 = vmatmul.mubr.bf16.vlgmr.msra.gmra.mrb[16].mxu1 %v511_v28  ;;  %v315_v60 = vpop.xlane.xlu0 %314  ;;  %v442_v61 = vmul.f32 %v1183_v55, %v394_v52 }
 0x1cf   :  { %v382_v0 = vmax.f32 %v366_v36, 0.0  ;;  %v336_v53 = vmul.f32 0.03125, %v315_v60  ;;  %v463_v12 = vmul.f32 %v1560_v18, %v443_v56  ;;  %v399_v56 = vsub.f32 %v1500_v3, %v1592_v22 }
 0x1d0   :  { %v1185_v2 = vpop.eup %1184  ;;  %v415_v6 = vadd.f32 1e-05, %v383_v58  ;;  %v369_v7 = vsub.f32 %v337_v59, %v353_v57  ;;  %v462_v10 = vmul.f32 %v1560_v18, %v442_v61  ;;  %v398_v61 = vsub.f32 %v1503_v4, %v1596_v34 }
 0x1d1   :  { %v1187_v31 = vpop.eup %1186  ;;  %v414_v17 = vadd.f32 1e-05, %v382_v0  ;;  %v368_v20 = vsub.f32 %v336_v53, %v352_v62  ;;  %v261_v21 = vpop.xlane.xlu1 %260  ;;  %v483_v23 = vadd.f32 %v1576_v42, %v463_v12  ;;  %v445_v39 = vmul.f32 %v1185_v2, %v397_v5 }
 0x1d2   :  { %1188 = vrsqrt.f32 %v415_v6  ;;  %v385_v25 = vmax.f32 %v369_v7, 0.0  ;;  %v259_v32 = vpop.xlane.xlu0 %258  ;;  %v482_v38 = vadd.f32 %v1576_v42, %v462_v10  ;;  %v444_v19 = vmul.f32 %v1187_v31, %v396_v40 }
 0x1d3   :  { %1190 = vrsqrt.f32 %v414_v17  ;;  %v384_v46 = vmax.f32 %v368_v20, 0.0  ;;  %v465_v48 = vmul.f32 %v1560_v18, %v445_v39  ;;  %v1630_v52 = vmul.f32 0.03125, %v261_v21 }
 0x1d4   :  { %v417_v41 = vadd.f32 1e-05, %v385_v25  ;;  %v496_v37 = vpack.c.bf16 %v483_v23, %v482_v38  ;;  %v464_v49 = vmul.f32 %v1560_v18, %v444_v19  ;;  %v1636_v57 = vmul.f32 0.03125, %v259_v32 }
 0x1d5   :  { %v416_v30 = vadd.f32 1e-05, %v384_v46  ;;  %v257_v44 = vpop.xlane.xlu1 %256  ;;  %v485_v54 = vadd.f32 %v1576_v42, %v465_v48  ;;  %v401_v12 = vsub.f32 %v1492_v63, %v1600_v43  ;;  %v357_v2 = vmul.f32 %v1630_v52, %v1630_v52 }
 0x1d6   :  { %1192 = vrsqrt.f32 %v417_v41  ;;  %v1623_v24 = vmul.f32 0.03125, %v257_v44  ;;  %v255_v45 = vpop.xlane.xlu0 %254  ;;  %v504_v47 = vmul.bf16 1009007652, %v496_v37  ;;  %v484_v29 = vadd.f32 %v1576_v42, %v464_v49 }
 0x1d7   :  { %1194 = vrsqrt.f32 %v416_v30  ;;  %v1626_v33 = vmul.f32 0.03125, %v255_v45  ;;  %v356_v4 = vmul.f32 %v1636_v57, %v1636_v57  ;;  %v400_v63 = vsub.f32 %v1495_v1, %v1604_v50 }
 0x1d8   :  { %v512_v51 = vmax.bf16 %v504_v47, %v496_v37  ;;  %v355_v28 = vmul.f32 %v1623_v24, %v1623_v24  ;;  %v497_v35 = vpack.c.bf16 %v485_v54, %v484_v29 }
 0x1d9   :  { %v321_v9 = vpop.xlane.xlu1 %320  ;;  %v354_v58 = vmul.f32 %v1626_v33, %v1626_v33 }
 0x1da   :  { %v339_v55 = vmul.f32 0.03125, %v321_v9  ;;  %1121 = vmatprep.mubr.bf16.mxu1 %v512_v51  ;;  %v319_v36 = vpop.xlane.xlu0 %318  ;;  %v505_v0 = vmul.bf16 1009007652, %v497_v35 }
 0x1db   :  { %v338_v59 = vmul.f32 0.03125, %v319_v36 }
 0x1dc   :  { %v1189_v60 = vpop.eup %1188  ;;  %v371_v62 = vsub.f32 %v339_v55, %v355_v28  ;;  %v513_v10 = vmax.bf16 %v505_v0, %v497_v35  ;;  %v403_v55 = vsub.f32 %v1524_v15, %v1623_v24  ;;  %v402_v35 = vsub.f32 %v1527_v16, %v1626_v33 }
 0x1dd   :  { %v1191_v53 = vpop.eup %1190  ;;  %v370_v3 = vsub.f32 %v338_v59, %v354_v58  ;;  %v325_v22 = vpop.xlane.xlu1 %324  ;;  %v447_v5 = vmul.f32 %v1189_v60, %v399_v56 }
 0x1de   :  { %v387_v6 = vmax.f32 %v371_v62, 0.0  ;;  %v341_v7 = vmul.f32 0.03125, %v325_v22  ;;  %v323_v31 = vpop.xlane.xlu0 %322  ;;  %v446_v40 = vmul.f32 %v1191_v53, %v398_v61  ;;  %1122 = vmatmul.mubr.bf16.gmra.mrb[20].mxu1 %v513_v10  ;;  %v405_v61 = vsub.f32 %v1516_v11, %v1630_v52 }
 0x1df   :  { %v386_v34 = vmax.f32 %v370_v3, 0.0  ;;  %v340_v17 = vmul.f32 0.03125, %v323_v31  ;;  %v467_v20 = vmul.f32 %v1560_v18, %v447_v5  ;;  %v404_v53 = vsub.f32 %v1519_v13, %v1636_v57  ;;  %v1677_v31 = vld [vmem:[%s1934_s4] sm:$0x7] }
 0x1e0   :  { %v1193_v21 = vpop.eup %1192  ;;  %v419_v43 = vadd.f32 1e-05, %v387_v6  ;;  %v373_v23 = vsub.f32 %v341_v7, %v357_v2  ;;  %v466_v25 = vmul.f32 %v1560_v18, %v446_v40 }
 0x1e1   :  { %v1195_v32 = vpop.eup %1194  ;;  %v418_v38 = vadd.f32 1e-05, %v386_v34  ;;  %v372_v39 = vsub.f32 %v340_v17, %v356_v4  ;;  %v487_v46 = vadd.f32 %v1576_v42, %v467_v20  ;;  %v449_v19 = vmul.f32 %v1193_v21, %v401_v12 }
 0x1e2   :  { %1196 = vrsqrt.f32 %v419_v43  ;;  %v389_v41 = vmax.f32 %v373_v23, 0.0  ;;  %v486_v37 = vadd.f32 %v1576_v42, %v466_v25  ;;  %v448_v30 = vmul.f32 %v1195_v32, %v400_v63 }
 0x1e3   :  { %1198 = vrsqrt.f32 %v418_v38  ;;  %v388_v44 = vmax.f32 %v372_v39, 0.0  ;;  %v469_v1 = vmul.f32 %v1560_v18, %v449_v19 }
 0x1e4   :  { %v421_v50 = vadd.f32 1e-05, %v389_v41  ;;  %v498_v49 = vpack.c.bf16 %v487_v46, %v486_v37  ;;  %v468_v45 = vmul.f32 %v1560_v18, %v448_v30 }
 0x1e5   :  { %v420_v47 = vadd.f32 1e-05, %v388_v44  ;;  %v489_v48 = vadd.f32 %v1576_v42, %v469_v1 }
 0x1e6   :  { %1200 = vrsqrt.f32 %v421_v50  ;;  %v506_v29 = vmul.bf16 1009007652, %v498_v49  ;;  %v488_v51 = vadd.f32 %v1576_v42, %v468_v45 }
 0x1e7   :  { %1202 = vrsqrt.f32 %v420_v47 }
 0x1e8   :  { %v514_v54 = vmax.bf16 %v506_v29, %v498_v49  ;;  %v499_v9 = vpack.c.bf16 %v489_v48, %v488_v51 }
 0x1ea   :  { %1125 = vmatprep.mubr.bf16.mxu1 %v514_v54  ;;  %v507_v28 = vmul.bf16 1009007652, %v499_v9 }
 0x1ec   :  { %v1197_v36 = vpop.eup %1196  ;;  %v515_v56 = vmax.bf16 %v507_v28, %v499_v9 }
 0x1ed   :  { %v1199_v58 = vpop.eup %1198  ;;  %v451_v59 = vmul.f32 %v1197_v36, %v403_v55 }
 0x1ee   :  { %1126 = vmatmul.mubr.bf16.gmra.mrb[24].mxu1 %v515_v56  ;;  %v450_v60 = vmul.f32 %v1199_v58, %v402_v35 }
 0x1ef   :  { %v471_v62 = vmul.f32 %v1560_v18, %v451_v59 }
 0x1f0   :  { %v1201_v0 = vpop.eup %1200  ;;  %v470_v15 = vmul.f32 %v1560_v18, %v450_v60 }
 0x1f1   :  { %v1203_v24 = vpop.eup %1202  ;;  %v491_v12 = vadd.f32 %v1576_v42, %v471_v62  ;;  %v453_v16 = vmul.f32 %v1201_v0, %v405_v61 }
 0x1f2   :  { %v490_v33 = vadd.f32 %v1576_v42, %v470_v15  ;;  %v452_v2 = vmul.f32 %v1203_v24, %v404_v53  ;;  %v1337_v15 = vmov 0.0  }
 0x1f3   :  { %v473_v3 = vmul.f32 %v1560_v18, %v453_v16  ;;  %1133 = vmatprep.subr.bf16.mxu0 %v1337_v15  ;;  %1149 = vmatprep.mubr.msk.bf16.mxu0 %vm1338_vm1, %v1337_v15 }
 0x1f4   :  { %v500_v22 = vpack.c.bf16 %v491_v12, %v490_v33  ;;  %v472_v11 = vmul.f32 %v1560_v18, %v452_v2  ;;  %v1682_v18 = vrot.slane %v1677_v31, %v100_v27 }
 0x1f5   :  { %v493_v52 = vadd.f32 %v1576_v42, %v473_v3 }
 0x1f6   :  { %v508_v5 = vmul.bf16 1009007652, %v500_v22  ;;  %v492_v6 = vadd.f32 %v1576_v42, %v472_v11 }
 0x1f8   :  { %v516_v13 = vmax.bf16 %v508_v5, %v500_v22  ;;  %v501_v57 = vpack.c.bf16 %v493_v52, %v492_v6 }
 0x1fa   :  { %1129 = vmatprep.mubr.bf16.mxu1 %v516_v13  ;;  %v509_v7 = vmul.bf16 1009007652, %v501_v57 }
 0x1fc   :  { %v517_v10 = vmax.bf16 %v509_v7, %v501_v57 }
 0x1fe   :  { %1130 = vmatmul.mubr.bf16.gmra.mrb[28].mxu1 %v517_v10 }
 0x2a1   :  { %v1119_v40 = vpop.f32.mrb[16].mxu1 }
 0x2a2   :  { %v621_v4 = vpop.f32.mrb[17].mxu1  ;;  %v1697_v63 = vadd.f32 %v1119_v40, %v1682_v18 }
 0x2a3   :  { %v1685_v42 = vadd.f32 %v621_v4, %v1682_v18  ;;  %v1120_v34 = vpop.f32.mrb[18].mxu1 }
 0x2a4   :  { %v624_v17 = vpop.f32.mrb[19].mxu1  ;;  %v1700_v43 = vadd.f32 %v1120_v34, %v1682_v18  ;;  %v734_v23 = vmul.f32 %v1697_v63, %v1697_v63 }
 0x2a5   :  { %v1688_v20 = vadd.f32 %v624_v17, %v1682_v18  ;;  %684 = vadd.xlane.f32.xlu0 %v1685_v42  ;;  %v732_v21 = vmul.f32 %v1685_v42, %v1685_v42 }
 0x2a6   :  { %v735_v25 = vmul.f32 %v1700_v43, %v1700_v43 }
 0x2a7   :  { %686 = vadd.xlane.f32.xlu1 %v1688_v20  ;;  %v733_v27 = vmul.f32 %v1688_v20, %v1688_v20 }
 0x2a9   :  { %748 = vadd.xlane.f32.xlu0 %v732_v21 }
 0x2ab   :  { %750 = vadd.xlane.f32.xlu1 %v733_v27 }
 0x2ad   :  { %688 = vadd.xlane.f32.xlu0 %v1697_v63 }
 0x2af   :  { %690 = vadd.xlane.f32.xlu1 %v1700_v43 }
 0x2b1   :  { %752 = vadd.xlane.f32.xlu0 %v734_v23  ;;  %v1123_v32 = vpop.f32.mrb[20].mxu1 }
 0x2b2   :  { %v637_v38 = vpop.f32.mrb[21].mxu1  ;;  %v1721_v44 = vadd.f32 %v1123_v32, %v1682_v18 }
 0x2b3   :  { %754 = vadd.xlane.f32.xlu1 %v735_v25  ;;  %v1709_v39 = vadd.f32 %v637_v38, %v1682_v18  ;;  %v1124_v46 = vpop.f32.mrb[22].mxu1 }
 0x2b4   :  { %v640_v19 = vpop.f32.mrb[23].mxu1  ;;  %v1724_v1 = vadd.f32 %v1124_v46, %v1682_v18  ;;  %v738_v50 = vmul.f32 %v1721_v44, %v1721_v44 }
 0x2b5   :  { %v1712_v41 = vadd.f32 %v640_v19, %v1682_v18  ;;  %692 = vadd.xlane.f32.xlu0 %v1709_v39  ;;  %v736_v37 = vmul.f32 %v1709_v39, %v1709_v39 }
 0x2b6   :  { %v739_v48 = vmul.f32 %v1724_v1, %v1724_v1 }
 0x2b7   :  { %694 = vadd.xlane.f32.xlu1 %v1712_v41  ;;  %v737_v30 = vmul.f32 %v1712_v41, %v1712_v41 }
 0x2b9   :  { %756 = vadd.xlane.f32.xlu0 %v736_v37 }
 0x2bb   :  { %758 = vadd.xlane.f32.xlu1 %v737_v30 }
 0x2bd   :  { %696 = vadd.xlane.f32.xlu0 %v1721_v44 }
 0x2bf   :  { %698 = vadd.xlane.f32.xlu1 %v1724_v1 }
 0x2c1   :  { %v1127_v49 = vpop.f32.mrb[24].mxu1  ;;  %760 = vadd.xlane.f32.xlu0 %v738_v50 }
 0x2c2   :  { %v653_v45 = vpop.f32.mrb[25].mxu1  ;;  %v1745_v55 = vadd.f32 %v1127_v49, %v1682_v18 }
 0x2c3   :  { %v1731_v47 = vadd.f32 %v653_v45, %v1682_v18  ;;  %v1128_v29 = vpop.f32.mrb[26].mxu1  ;;  %762 = vadd.xlane.f32.xlu1 %v739_v48 }
 0x2c4   :  { %v656_v51 = vpop.f32.mrb[27].mxu1  ;;  %v1748_v36 = vadd.f32 %v1128_v29, %v1682_v18  ;;  %v742_v35 = vmul.f32 %v1745_v55, %v1745_v55 }
 0x2c5   :  { %v1736_v54 = vadd.f32 %v656_v51, %v1682_v18  ;;  %700 = vadd.xlane.f32.xlu0 %v1731_v47  ;;  %v740_v9 = vmul.f32 %v1731_v47, %v1731_v47 }
 0x2c6   :  { %v743_v60 = vmul.f32 %v1748_v36, %v1748_v36 }
 0x2c7   :  { %702 = vadd.xlane.f32.xlu1 %v1736_v54  ;;  %v741_v28 = vmul.f32 %v1736_v54, %v1736_v54 }
 0x2c9   :  { %764 = vadd.xlane.f32.xlu0 %v740_v9 }
 0x2cb   :  { %766 = vadd.xlane.f32.xlu1 %v741_v28 }
 0x2cd   :  { %704 = vadd.xlane.f32.xlu0 %v1745_v55 }
 0x2cf   :  { %706 = vadd.xlane.f32.xlu1 %v1748_v36 }
 0x2d1   :  { %v1131_v56 = vpop.f32.mrb[28].mxu1  ;;  %768 = vadd.xlane.f32.xlu0 %v742_v35 }
 0x2d2   :  { %v669_v58 = vpop.f32.mrb[29].mxu1  ;;  %v1770_v12 = vadd.f32 %v1131_v56, %v1682_v18 }
 0x2d3   :  { %v1755_v59 = vadd.f32 %v669_v58, %v1682_v18  ;;  %v1132_v61 = vpop.f32.mrb[30].mxu1  ;;  %770 = vadd.xlane.f32.xlu1 %v743_v60  ;;  %v1795_v58 = vrot.slane %v1677_v31, %v456_v8 }
 0x2d4   :  { %v672_v62 = vpop.f32.mrb[31].mxu1  ;;  %v1773_v16 = vadd.f32 %v1132_v61, %v1682_v18  ;;  %v746_v33 = vmul.f32 %v1770_v12, %v1770_v12 }
 0x2d5   :  { %v1760_v0 = vadd.f32 %v672_v62, %v1682_v18  ;;  %708 = vadd.xlane.f32.xlu0 %v1755_v59  ;;  %v744_v53 = vmul.f32 %v1755_v59, %v1755_v59 }
 0x2d6   :  { %v747_v2 = vmul.f32 %v1773_v16, %v1773_v16 }
 0x2d7   :  { %710 = vadd.xlane.f32.xlu1 %v1760_v0  ;;  %v745_v24 = vmul.f32 %v1760_v0, %v1760_v0 }
 0x2d9   :  { %772 = vadd.xlane.f32.xlu0 %v744_v53 }
 0x2db   :  { %774 = vadd.xlane.f32.xlu1 %v745_v24 }
 0x2dd   :  { %712 = vadd.xlane.f32.xlu0 %v1770_v12 }
 0x2df   :  { %714 = vadd.xlane.f32.xlu1 %v1773_v16 }
 0x2e1   :  { %776 = vadd.xlane.f32.xlu0 %v746_v33 }
 0x2e3   :  { %778 = vadd.xlane.f32.xlu1 %v747_v2 }
 0x332   :  { %v685_v3 = vpop.xlane.xlu0 %684 }
 0x333   :  { %v716_v22 = vmul.f32 0.03125, %v685_v3 }
 0x334   :  { %v687_v11 = vpop.xlane.xlu1 %686 }
 0x335   :  { %v717_v52 = vmul.f32 0.03125, %v687_v11  ;;  %v796_v6 = vmul.f32 %v716_v22, %v716_v22  ;;  %v844_v60 = vsub.f32 %v1685_v42, %v716_v22  ;;  %v1808_v42 = vrot.slane %v1677_v31, %v476_v14 }
 0x336   :  { %v749_v5 = vpop.xlane.xlu0 %748 }
 0x337   :  { %v780_v13 = vmul.f32 0.03125, %v749_v5  ;;  %v797_v7 = vmul.f32 %v717_v52, %v717_v52  ;;  %v845_v2 = vsub.f32 %v1688_v20, %v717_v52 }
 0x338   :  { %v751_v57 = vpop.xlane.xlu1 %750 }
 0x339   :  { %v812_v10 = vsub.f32 %v780_v13, %v796_v6  ;;  %v781_v18 = vmul.f32 0.03125, %v751_v57 }
 0x33a   :  { %v689_v40 = vpop.xlane.xlu0 %688 }
 0x33b   :  { %v828_v4 = vmax.f32 %v812_v10, 0.0  ;;  %v813_v34 = vsub.f32 %v781_v18, %v797_v7  ;;  %v1782_v17 = vmul.f32 0.03125, %v689_v40 }
 0x33c   :  { %v691_v21 = vpop.xlane.xlu1 %690 }
 0x33d   :  { %v860_v27 = vadd.f32 1e-05, %v828_v4  ;;  %v829_v23 = vmax.f32 %v813_v34, 0.0  ;;  %v1784_v25 = vmul.f32 0.03125, %v691_v21  ;;  %v798_v46 = vmul.f32 %v1782_v17, %v1782_v17 }
 0x33e   :  { %v753_v32 = vpop.xlane.xlu0 %752  ;;  %v846_v21 = vsub.f32 %v1697_v63, %v1782_v17 }
 0x33f   :  { %1204 = vrsqrt.f32 %v860_v27  ;;  %v861_v38 = vadd.f32 1e-05, %v829_v23  ;;  %v782_v19 = vmul.f32 0.03125, %v753_v32  ;;  %v799_v30 = vmul.f32 %v1784_v25, %v1784_v25 }
 0x340   :  { %v755_v37 = vpop.xlane.xlu1 %754 }
 0x341   :  { %1206 = vrsqrt.f32 %v861_v38  ;;  %v814_v50 = vsub.f32 %v782_v19, %v798_v46  ;;  %v783_v49 = vmul.f32 0.03125, %v755_v37  ;;  %v847_v19 = vsub.f32 %v1700_v43, %v1784_v25 }
 0x342   :  { %v693_v29 = vpop.xlane.xlu0 %692 }
 0x343   :  { %v830_v45 = vmax.f32 %v814_v50, 0.0  ;;  %v815_v48 = vsub.f32 %v783_v49, %v799_v30  ;;  %v1790_v28 = vmul.f32 0.03125, %v693_v29 }
 0x344   :  { %v695_v35 = vpop.xlane.xlu1 %694 }
 0x345   :  { %v862_v51 = vadd.f32 1e-05, %v830_v45  ;;  %v831_v9 = vmax.f32 %v815_v48, 0.0  ;;  %v1798_v61 = vmul.f32 0.03125, %v695_v35  ;;  %v800_v24 = vmul.f32 %v1790_v28, %v1790_v28 }
 0x346   :  { %v757_v62 = vpop.xlane.xlu0 %756 }
 0x347   :  { %1208 = vrsqrt.f32 %v862_v51  ;;  %v863_v56 = vadd.f32 1e-05, %v831_v9  ;;  %v784_v33 = vmul.f32 0.03125, %v757_v62  ;;  %v801_v8 = vmul.f32 %v1798_v61, %v1798_v61 }
 0x348   :  { %v759_v3 = vpop.xlane.xlu1 %758 }
 0x349   :  { %v1205_v53 = vpop.eup %1204  ;;  %1210 = vrsqrt.f32 %v863_v56  ;;  %v816_v6 = vsub.f32 %v784_v33, %v800_v24  ;;  %v785_v13 = vmul.f32 0.03125, %v759_v3 }
 0x34a   :  { %v892_v11 = vmul.f32 %v1205_v53, %v844_v60  ;;  %v697_v22 = vpop.xlane.xlu0 %696 }
 0x34b   :  { %v1207_v5 = vpop.eup %1206  ;;  %v832_v10 = vmax.f32 %v816_v6, 0.0  ;;  %v817_v18 = vsub.f32 %v785_v13, %v801_v8  ;;  %v1811_v20 = vmul.f32 0.03125, %v697_v22  ;;  %v848_v13 = vsub.f32 %v1709_v39, %v1790_v28 }
 0x34c   :  { %v893_v57 = vmul.f32 %v1207_v5, %v845_v2  ;;  %v912_v7 = vmul.f32 %v1795_v58, %v892_v11  ;;  %v699_v52 = vpop.xlane.xlu1 %698 }
 0x34d   :  { %v864_v4 = vadd.f32 1e-05, %v832_v10  ;;  %v833_v34 = vmax.f32 %v817_v18, 0.0  ;;  %v1816_v26 = vmul.f32 0.03125, %v699_v52  ;;  %v802_v38 = vmul.f32 %v1811_v20, %v1811_v20 }
 0x34e   :  { %v913_v40 = vmul.f32 %v1795_v58, %v893_v57  ;;  %v761_v14 = vpop.xlane.xlu0 %760  ;;  %v932_v31 = vadd.f32 %v1808_v42, %v912_v7 }
 0x34f   :  { %1212 = vrsqrt.f32 %v864_v4  ;;  %v865_v32 = vadd.f32 1e-05, %v833_v34  ;;  %v786_v46 = vmul.f32 0.03125, %v761_v14  ;;  %v803_v50 = vmul.f32 %v1816_v26, %v1816_v26 }
 0x350   :  { %v933_v27 = vadd.f32 %v1808_v42, %v913_v40  ;;  %v763_v37 = vpop.xlane.xlu1 %762  ;;  %v849_v40 = vsub.f32 %v1712_v41, %v1798_v61 }
 0x351   :  { %v1209_v23 = vpop.eup %1208  ;;  %1214 = vrsqrt.f32 %v865_v32  ;;  %v818_v49 = vsub.f32 %v786_v46, %v802_v38  ;;  %v787_v45 = vmul.f32 0.03125, %v763_v37 }
 0x352   :  { %v948_v30 = vpack.c.bf16 %v933_v27, %v932_v31  ;;  %v894_v63 = vmul.f32 %v1209_v23, %v846_v21  ;;  %v701_v48 = vpop.xlane.xlu0 %700 }
 0x353   :  { %v1211_v17 = vpop.eup %1210  ;;  %v834_v35 = vmax.f32 %v818_v49, 0.0  ;;  %v819_v56 = vsub.f32 %v787_v45, %v803_v50  ;;  %v1827_v60 = vmul.f32 0.03125, %v701_v48  ;;  %v850_v50 = vsub.f32 %v1721_v44, %v1811_v20 }
 0x354   :  { %v956_v29 = vmul.bf16 1009007652, %v948_v30  ;;  %v895_v51 = vmul.f32 %v1211_v17, %v847_v19  ;;  %v914_v9 = vmul.f32 %v1795_v58, %v894_v63  ;;  %v703_v43 = vpop.xlane.xlu1 %702 }
 0x355   :  { %v866_v53 = vadd.f32 1e-05, %v834_v35  ;;  %v835_v24 = vmax.f32 %v819_v56, 0.0  ;;  %v1830_v33 = vmul.f32 0.03125, %v703_v43  ;;  %v804_v8 = vmul.f32 %v1827_v60, %v1827_v60 }
 0x356   :  { %v964_v25 = vmax.bf16 %v956_v29, %v948_v30  ;;  %v915_v62 = vmul.f32 %v1795_v58, %v895_v51  ;;  %v765_v2 = vpop.xlane.xlu0 %764  ;;  %v934_v3 = vadd.f32 %v1808_v42, %v914_v9  ;;  %v851_v56 = vsub.f32 %v1724_v1, %v1816_v26 }
 0x357   :  { %1216 = vrsqrt.f32 %v866_v53  ;;  %v867_v5 = vadd.f32 1e-05, %v835_v24  ;;  %v788_v6 = vmul.f32 0.03125, %v765_v2  ;;  %v805_v10 = vmul.f32 %v1830_v33, %v1830_v33 }
 0x358   :  { %1134 = vmatpush3.bf16.xpose.msra.mxu0 %v964_v25  ;;  %v935_v11 = vadd.f32 %v1808_v42, %v915_v62  ;;  %v767_v22 = vpop.xlane.xlu1 %766 }
 0x359   :  { %1135 = vmatprep.subr.bf16.mxu0 %v1337_v15  ;;  %v1213_v7 = vpop.eup %1212  ;;  %1218 = vrsqrt.f32 %v867_v5  ;;  %v820_v18 = vsub.f32 %v788_v6, %v804_v8  ;;  %v789_v52 = vmul.f32 0.03125, %v767_v22 }
 0x35a   :  { %v949_v57 = vpack.c.bf16 %v935_v11, %v934_v3  ;;  %v705_v4 = vpop.xlane.xlu0 %704  ;;  %v896_v21 = vmul.f32 %v1213_v7, %v848_v13 }
 0x35b   :  { %v1215_v14 = vpop.eup %1214  ;;  %v836_v31 = vmax.f32 %v820_v18, 0.0  ;;  %v821_v27 = vsub.f32 %v789_v52, %v805_v10  ;;  %v1843_v23 = vmul.f32 0.03125, %v705_v4  ;;  %v852_v18 = vsub.f32 %v1731_v47, %v1827_v60 }
 0x35c   :  { %v957_v34 = vmul.bf16 1009007652, %v949_v57  ;;  %v707_v39 = vpop.xlane.xlu1 %706  ;;  %v897_v32 = vmul.f32 %v1215_v14, %v849_v40  ;;  %v916_v38 = vmul.f32 %v1795_v58, %v896_v21 }
 0x35d   :  { %v868_v46 = vadd.f32 1e-05, %v836_v31  ;;  %v837_v19 = vmax.f32 %v821_v27, 0.0  ;;  %v1846_v37 = vmul.f32 0.03125, %v707_v39  ;;  %v806_v63 = vmul.f32 %v1843_v23, %v1843_v23 }
 0x35e   :  { %v965_v28 = vmax.bf16 %v957_v34, %v949_v57  ;;  %v769_v30 = vpop.xlane.xlu0 %768  ;;  %v917_v41 = vmul.f32 %v1795_v58, %v897_v32  ;;  %v936_v45 = vadd.f32 %v1808_v42, %v916_v38  ;;  %v853_v27 = vsub.f32 %v1736_v54, %v1830_v33 }
 0x35f   :  { %1220 = vrsqrt.f32 %v868_v46  ;;  %v869_v61 = vadd.f32 1e-05, %v837_v19  ;;  %v790_v17 = vmul.f32 0.03125, %v769_v30  ;;  %v807_v51 = vmul.f32 %v1846_v37, %v1846_v37 }
 0x360   :  { %1136 = vmatpush3.bf16.xpose.msra.mxu0 %v965_v28  ;;  %v771_v49 = vpop.xlane.xlu1 %770  ;;  %v937_v48 = vadd.f32 %v1808_v42, %v917_v41 }
 0x361   :  { %1137 = vmatprep.subr.bf16.mxu0 %v1337_v15  ;;  %v1217_v29 = vpop.eup %1216  ;;  %1222 = vrsqrt.f32 %v869_v61  ;;  %v822_v9 = vsub.f32 %v790_v17, %v806_v63  ;;  %v791_v35 = vmul.f32 0.03125, %v771_v49 }
 0x362   :  { %v709_v43 = vpop.xlane.xlu0 %708  ;;  %v950_v25 = vpack.c.bf16 %v937_v48, %v936_v45  ;;  %v898_v62 = vmul.f32 %v1217_v29, %v850_v50 }
 0x363   :  { %v1219_v53 = vpop.eup %1218  ;;  %v838_v44 = vmax.f32 %v822_v9, 0.0  ;;  %v823_v20 = vsub.f32 %v791_v35, %v807_v51  ;;  %v1860_v24 = vmul.f32 0.03125, %v709_v43  ;;  %v854_v51 = vsub.f32 %v1745_v55, %v1843_v23 }
 0x364   :  { %v711_v2 = vpop.xlane.xlu1 %710  ;;  %v958_v3 = vmul.bf16 1009007652, %v950_v25  ;;  %v899_v11 = vmul.f32 %v1219_v53, %v851_v56  ;;  %v918_v5 = vmul.f32 %v1795_v58, %v898_v62 }
 0x365   :  { %v870_v8 = vadd.f32 1e-05, %v838_v44  ;;  %v839_v6 = vmax.f32 %v823_v20, 0.0  ;;  %v1863_v13 = vmul.f32 0.03125, %v711_v2  ;;  %v808_v7 = vmul.f32 %v1860_v24, %v1860_v24 }
 0x366   :  { %v773_v22 = vpop.xlane.xlu0 %772  ;;  %v966_v57 = vmax.bf16 %v958_v3, %v950_v25  ;;  %v919_v1 = vmul.f32 %v1795_v58, %v899_v11  ;;  %v938_v40 = vadd.f32 %v1808_v42, %v918_v5  ;;  %v855_v44 = vsub.f32 %v1748_v36, %v1846_v37 }
 0x367   :  { %1224 = vrsqrt.f32 %v870_v8  ;;  %v871_v26 = vadd.f32 1e-05, %v839_v6  ;;  %v792_v10 = vmul.f32 0.03125, %v773_v22  ;;  %v809_v21 = vmul.f32 %v1863_v13, %v1863_v13 }
 0x368   :  { %v775_v52 = vpop.xlane.xlu1 %774  ;;  %1138 = vmatpush3.bf16.xpose.msra.mxu0 %v966_v57  ;;  %v939_v4 = vadd.f32 %v1808_v42, %v919_v1 }
 0x369   :  { %v1221_v34 = vpop.eup %1220  ;;  %1226 = vrsqrt.f32 %v871_v26  ;;  %v824_v14 = vsub.f32 %v792_v10, %v808_v7  ;;  %v793_v31 = vmul.f32 0.03125, %v775_v52  ;;  %1139 = vmatprep.subr.bf16.mxu0 %v1337_v15  ;;  %v856_v7 = vsub.f32 %v1755_v59, %v1860_v24 }
 0x36a   :  { %v713_v39 = vpop.xlane.xlu0 %712  ;;  %v951_v47 = vpack.c.bf16 %v939_v4, %v938_v40  ;;  %v900_v60 = vmul.f32 %v1221_v34, %v852_v18  ;;  %v857_v18 = vsub.f32 %v1760_v0, %v1863_v13 }
 0x36b   :  { %v1223_v28 = vpop.eup %1222  ;;  %v840_v32 = vmax.f32 %v824_v14, 0.0  ;;  %v825_v38 = vsub.f32 %v793_v31, %v809_v21  ;;  %v1877_v46 = vmul.f32 0.03125, %v713_v39 }
 0x36c   :  { %v715_v19 = vpop.xlane.xlu1 %714  ;;  %v959_v30 = vmul.bf16 1009007652, %v951_v47  ;;  %v901_v41 = vmul.f32 %v1223_v28, %v853_v27  ;;  %v920_v61 = vmul.f32 %v1795_v58, %v900_v60 }
 0x36d   :  { %v872_v63 = vadd.f32 1e-05, %v840_v32  ;;  %v841_v17 = vmax.f32 %v825_v38, 0.0  ;;  %v731_v50 = vmul.f32 0.03125, %v715_v19  ;;  %v810_v48 = vmul.f32 %v1877_v46, %v1877_v46 }
 0x36e   :  { %v777_v49 = vpop.xlane.xlu0 %776  ;;  %v967_v45 = vmax.bf16 %v959_v30, %v951_v47  ;;  %v921_v54 = vmul.f32 %v1795_v58, %v901_v41  ;;  %v940_v35 = vadd.f32 %v1808_v42, %v920_v61  ;;  %v858_v31 = vsub.f32 %v1770_v12, %v1877_v46 }
 0x36f   :  { %1228 = vrsqrt.f32 %v872_v63  ;;  %v873_v33 = vadd.f32 1e-05, %v841_v17  ;;  %v794_v29 = vmul.f32 0.03125, %v777_v49  ;;  %v811_v25 = vmul.f32 %v731_v50, %v731_v50  ;;  %v972_v17 = vld [vmem:[%s1935_s5] sm:$0x1] }
 0x370   :  { %v779_v9 = vpop.xlane.xlu1 %778  ;;  %1140 = vmatpush3.bf16.xpose.msra.mxu0 %v967_v45  ;;  %v941_v56 = vadd.f32 %v1808_v42, %v921_v54  ;;  %v859_v0 = vsub.f32 %v1773_v16, %v731_v50 }
 0x371   :  { %v1225_v43 = vpop.eup %1224  ;;  %1230 = vrsqrt.f32 %v873_v33  ;;  %v826_v62 = vsub.f32 %v794_v29, %v810_v48  ;;  %v795_v53 = vmul.f32 0.03125, %v779_v9  ;;  %1141 = vmatprep.subr.bf16.mxu0 %v1337_v15 }
 0x372   :  { %v952_v20 = vpack.c.bf16 %v941_v56, %v940_v35  ;;  %v902_v2 = vmul.f32 %v1225_v43, %v854_v51 }
 0x373   :  { %v1227_v3 = vpop.eup %1226  ;;  %v842_v55 = vmax.f32 %v826_v62, 0.0  ;;  %v827_v23 = vsub.f32 %v795_v53, %v811_v25 }
 0x374   :  { %v960_v11 = vmul.bf16 1009007652, %v952_v20  ;;  %v903_v5 = vmul.f32 %v1227_v3, %v855_v44  ;;  %v922_v8 = vmul.f32 %v1795_v58, %v902_v2 }
 0x375   :  { %v874_v6 = vadd.f32 1e-05, %v842_v55  ;;  %v843_v22 = vmax.f32 %v827_v23, 0.0 }
 0x376   :  { %v968_v57 = vmax.bf16 %v960_v11, %v952_v20  ;;  %v923_v1 = vmul.f32 %v1795_v58, %v903_v5  ;;  %v942_v36 = vadd.f32 %v1808_v42, %v922_v8 }
 0x377   :  { %1232 = vrsqrt.f32 %v874_v6  ;;  %v875_v26 = vadd.f32 1e-05, %v843_v22 }
 0x378   :  { %1142 = vmatpush3.bf16.xpose.msra.mxu0 %v968_v57  ;;  %v943_v37 = vadd.f32 %v1808_v42, %v923_v1 }
 0x379   :  { %v1229_v10 = vpop.eup %1228  ;;  %1234 = vrsqrt.f32 %v875_v26  ;;  %1143 = vmatprep.subr.bf16.mxu0 %v1337_v15 }
 0x37a   :  { %v953_v52 = vpack.c.bf16 %v943_v37, %v942_v36  ;;  %v904_v40 = vmul.f32 %v1229_v10, %v856_v7 }
 0x37b   :  { %v1231_v4 = vpop.eup %1230 }
 0x37c   :  { %v961_v34 = vmul.bf16 1009007652, %v953_v52  ;;  %v905_v21 = vmul.f32 %v1231_v4, %v857_v18  ;;  %v924_v14 = vmul.f32 %v1795_v58, %v904_v40 }
 0x37e   :  { %v969_v59 = vmax.bf16 %v961_v34, %v953_v52  ;;  %v925_v24 = vmul.f32 %v1795_v58, %v905_v21  ;;  %v944_v27 = vadd.f32 %v1808_v42, %v924_v14 }
 0x380   :  { %1144 = vmatpush3.bf16.xpose.msra.mxu0 %v969_v59  ;;  %v945_v39 = vadd.f32 %v1808_v42, %v925_v24 }
 0x381   :  { %v1233_v47 = vpop.eup %1232  ;;  %1145 = vmatprep.subr.bf16.mxu0 %v1337_v15 }
 0x382   :  { %v954_v13 = vpack.c.bf16 %v945_v39, %v944_v27  ;;  %v906_v60 = vmul.f32 %v1233_v47, %v858_v31 }
 0x383   :  { %v1235_v28 = vpop.eup %1234 }
 0x384   :  { %v962_v32 = vmul.bf16 1009007652, %v954_v13  ;;  %v907_v38 = vmul.f32 %v1235_v28, %v859_v0  ;;  %v926_v19 = vmul.f32 %v1795_v58, %v906_v60 }
 0x386   :  { %v970_v30 = vmax.bf16 %v962_v32, %v954_v13  ;;  %v927_v12 = vmul.f32 %v1795_v58, %v907_v38  ;;  %v946_v46 = vadd.f32 %v1808_v42, %v926_v19  ;;  %v974_v58 = vstv %s1936_s6 }
 0x388   :  { %1146 = vmatpush3.bf16.xpose.msra.mxu0 %v970_v30  ;;  %v947_v41 = vadd.f32 %v1808_v42, %v927_v12 }
 0x389   :  { %1147 = vmatprep.subr.bf16.mxu0 %v1337_v15 }
 0x38a   :  { %v955_v61 = vpack.c.bf16 %v947_v41, %v946_v46 }
 0x38c   :  { %v963_v63 = vmul.bf16 1009007652, %v955_v61 }
 0x38e   :  { %v971_v16 = vmax.bf16 %v963_v63, %v955_v61 }
 0x390   :  { %1148 = vmatpush3.bf16.xpose.msra.mxu0 %v971_v16 }
 0x397   :  { %1150 = vmatmul.mubr.bf16.vlgmr.msra.gmra.mrb[0].mxu0 %v972_v17 }
 0x46a   :  { %v1009_v50 = vpop.f32.mrb[0].mxu0 }
 0x46b   :  { %v1010_v49 = vadd.f32 %v1009_v50, %v974_v58  ;;  %v1151_v42 = vpop.f32.mrb[1].mxu0 }
 0x46c   :  { %v1012_v15 = vpop.f32.mrb[2].mxu0 }
 0x46d   :  { %1015 = vst [vmem:[#allocation9] sm:$0x1] %v1010_v49  ;;  %v1152_v45 = vpop.f32.mrb[3].mxu0 }
 0x46e   :  { %1313 = shalt.err (!%p1310_p0)
}
 0x46f   :  { %s1314_s6 = scalar_lea.hbm %s1937_s7, 16 }
 0x470   :  { %p1315_p1 = scmp.ne.s32.totalorder %s1937_s7, %s1314_s6  ;;  %p1318_p2 = scmp.lt.u32.totalorder %s1314_s6, %s1937_s7 }
 0x472   :  { %p1320_p3 = pnand %p1318_p2, %p1315_p1 }
 0x474   :  { %1323 = shalt.err (!%p1320_p3)
}
 0x475   :  { %1025 = dma.vmem_to_hbm [thread:$0]  %s1023_s23, 16, %s1937_s7, [#allocation5]  }
 0x476   :  { %1328 = dma.done.wait [#allocation5], 16  }
 0x477   :  { %1329 = vsyncadd [#allocation5], 4294967280 }
 0x478   :  { %1029 = vsyncpa [#allocation4], 1 }
 0x479   :  { %1030 = vsyncpa [#allocation7], 1 }
 0x47a   :  { %1031 = vsyncpa [#allocation5], 1 }

</bundles_post_ra>
